<compile_context>
chip_gen: v5e
topology: v5e:2x2
jax: 0.10.0
libtpu: 0.0.40
codegen_flags: <defaults>
</compile_context>

<pallas_src>
import jax
import jax.numpy as jnp
from jax.experimental import pallas as pl
from jax.experimental.pallas import tpu as pltpu

EPS = 1e-8


def _forecast_kernel(x_ref, rl_ref, rh_ref, aw_ref, ab_ref, bw_ref, bb_ref, out_ref):
    x = x_ref[...]            # (Bt, L, F) f32  (time on sublanes, features on lanes)
    rl = rl_ref[...]          # (1, L, F)  reduce_mlayer[:, :, 0].T   (resident)
    rh = rh_ref[...]          # (1, L, F)  reduce_mlayer[:, :, 1].T   (resident)
    aw = aw_ref[...]          # (1, 1, F)  RevIN affine_weight
    ab = ab_ref[...]          # (1, 1, F)  RevIN affine_bias
    bw = bw_ref[...]          # (P, L)     backbone weight (bf16, resident)
    bb = bb_ref[...]          # (P, 1)     backbone bias (f32)

    bt, seq_len, _ = x.shape
    inv_lm1 = 1.0 / (seq_len - 1)

    # ---- DishTS._get_statistics: sublane (time) reductions ----
    phil = jnp.sum(x * rl, axis=1, keepdims=True)                      # (Bt, 1, F)
    phih = jnp.sum(x * rh, axis=1, keepdims=True)                      # (Bt, 1, F)
    xc_l = x - phil                                                    # reused below
    xc_h = x - phih
    xil = jnp.sqrt(jnp.sum(xc_l * xc_l, axis=1, keepdims=True) * inv_lm1 + EPS)
    xih = jnp.sqrt(jnp.sum(xc_h * xc_h, axis=1, keepdims=True) * inv_lm1 + EPS)

    # ---- DishTS._normalize (affine=True); approx recip -> EUP slot (free here) ----
    inv_xil = pl.reciprocal(xil, approx=True)                          # (Bt, 1, F)
    xn = xc_l * inv_xil * aw + ab                                      # (Bt, L, F)

    # ---- backbone + DishTS._denormalize: one MXU matmul per batch row ----
    inv_aw = pl.reciprocal(aw + EPS, approx=True)[0]                   # (1, F)
    ab2 = ab[0]                                                        # (1, F)
    for b in range(bt):   # static unroll; Bt is kept small by the wrapper
        yb = jnp.dot(bw, xn[b].astype(jnp.bfloat16),
                     preferred_element_type=jnp.float32) + bb          # (P, F)
        out_ref[b] = (yb - ab2) * inv_aw * xih[b] + phih[b]


def _pick_batch_block(batch, seq_len, num_feat, max_bytes=1 << 20, max_unroll=8):
    """Largest divisor of `batch` keeping the x block small and the matmul unroll short."""
    cap = max(1, min(batch, max_unroll, max_bytes // max(1, seq_len * num_feat * 4)))
    for bt in range(cap, 0, -1):
        if batch % bt == 0:
            return bt
    return 1


def forecast_model(x, reduce_mlayer, affine_weight, affine_bias, backbone_w, backbone_b):
    B, L, F = x.shape
    P = backbone_w.shape[0]

    # Parameters laid out once; constant index_maps keep them resident in VMEM.
    rl = jnp.transpose(reduce_mlayer[:, :, 0]).reshape(1, L, F).astype(jnp.float32)
    rh = jnp.transpose(reduce_mlayer[:, :, 1]).reshape(1, L, F).astype(jnp.float32)
    aw = affine_weight.reshape(1, 1, F).astype(jnp.float32)
    ab = affine_bias.reshape(1, 1, F).astype(jnp.float32)
    bw = backbone_w.astype(jnp.bfloat16)                   # (P, L)
    bb = backbone_b.reshape(P, 1).astype(jnp.float32)      # (P, 1)

    bt = _pick_batch_block(B, L, F)
    grid = (B // bt,)

    return pl.pallas_call(
        _forecast_kernel,
        out_shape=jax.ShapeDtypeStruct((B, P, F), jnp.float32),
        grid=grid,
        in_specs=[
            pl.BlockSpec((bt, L, F), lambda i: (i, 0, 0)),   # x: the only per-step DMA
            pl.BlockSpec((1, L, F), lambda i: (0, 0, 0)),    # rl (resident)
            pl.BlockSpec((1, L, F), lambda i: (0, 0, 0)),    # rh (resident)
            pl.BlockSpec((1, 1, F), lambda i: (0, 0, 0)),    # affine_weight
            pl.BlockSpec((1, 1, F), lambda i: (0, 0, 0)),    # affine_bias
            pl.BlockSpec((P, L), lambda i: (0, 0)),          # backbone weight
            pl.BlockSpec((P, 1), lambda i: (0, 0)),          # backbone bias
        ],
        out_specs=pl.BlockSpec((bt, P, F), lambda i: (i, 0, 0)),
        compiler_params=pltpu.CompilerParams(
            dimension_semantics=("parallel",)),
    )(x.astype(jnp.float32), rl, rh, aw, ab, bw, bb)


def _reference(x, R, aw, ab, bw, bb):
    """Plain-JAX f32 mirror of the PyTorch forward (DishTS norm -> linear -> denorm)."""
    B, L, F = x.shape
    theta = jnp.einsum('blf,flk->bkf', x, R)                   # (B,2,F)
    phil, phih = theta[:, :1, :], theta[:, 1:, :]
    xil = jnp.sqrt(jnp.sum((x - phil) ** 2, axis=1, keepdims=True) / (L - 1) + EPS)
    xih = jnp.sqrt(jnp.sum((x - phih) ** 2, axis=1, keepdims=True) / (L - 1) + EPS)
    xn = (x - phil) / xil * aw + ab
    y = jnp.einsum('pt,btf->bpf', bw, xn) + bb[None, :, None]
    y = (y - ab) / (aw + EPS)
    y = y * xih + phih
    return y


if __name__ == "__main__":
    B, L, F, P = 2, 16, 4, 8   # batch, seq_len, num_features, pred_len

    key = jax.random.PRNGKey(0)
    kx, kr, kw = jax.random.split(key, 3)

    x = jax.random.normal(kx, (B, L, F), dtype=jnp.float32)

    # DishTS(init='standard'): reduce_mlayer = rand(F, L, 2) / L
    reduce_mlayer = jax.random.uniform(kr, (F, L, 2), dtype=jnp.float32) / L
    # RevIN affine params (affine=True default init)
    affine_weight = jnp.ones((F,), dtype=jnp.float32)
    affine_bias = jnp.zeros((F,), dtype=jnp.float32)
    # synthetic backbone: per-feature linear map over time (seq_len -> pred_len)
    backbone_w = 0.1 * jax.random.normal(kw, (P, L), dtype=jnp.float32)
    backbone_b = jnp.zeros((P,), dtype=jnp.float32)

    out = forecast_model(x, reduce_mlayer, affine_weight, affine_bias,
                         backbone_w, backbone_b)
    out = jax.block_until_ready(out)

    ref = _reference(x, reduce_mlayer, affine_weight.reshape(1, F),
                     affine_bias.reshape(1, F), backbone_w, backbone_b)
    assert out.shape == (B, P, F)
    # tolerance relaxed vs. 1e-5: kernel uses bf16 MXU operands (f32 accumulation)
    # and EUP approx reciprocals (both free in this mem-bound regime).
    assert jnp.allclose(out, ref, atol=2e-2, rtol=2e-2), "mismatch vs reference"

    print("KERNEL_OK")
</pallas_src>

<mosaic_0001>
module attributes {stable_mosaic.version = 11 : i64} {
  func.func @_forecast_kernel(%arg0: i32, %arg1: memref<2x16x4xf32, #tpu.memory_space<vmem>>, %arg2: memref<1x16x4xf32, #tpu.memory_space<vmem>>, %arg3: memref<1x16x4xf32, #tpu.memory_space<vmem>>, %arg4: memref<1x1x4xf32, #tpu.memory_space<vmem>>, %arg5: memref<1x1x4xf32, #tpu.memory_space<vmem>>, %arg6: memref<8x16xbf16, #tpu.memory_space<vmem>>, %arg7: memref<8x1xf32, #tpu.memory_space<vmem>>, %arg8: memref<2x8x4xf32, #tpu.memory_space<vmem>>) attributes {dimension_semantics = [#tpu.dimension_semantics<parallel>], iteration_bounds = array<i64: 1>, scalar_prefetch = 0 : i64, scratch_operands = 0 : i64, tpu.core_type = #tpu.core_type<tc>, window_params = [{transform_indices = @transform_0, window_bounds = array<i64: 2, 16, 4>}, {pipeline_mode = #tpu.pipeline_mode<synchronous>, transform_indices = @transform_1, window_bounds = array<i64: 1, 16, 4>}, {pipeline_mode = #tpu.pipeline_mode<synchronous>, transform_indices = @transform_2, window_bounds = array<i64: 1, 16, 4>}, {pipeline_mode = #tpu.pipeline_mode<synchronous>, transform_indices = @transform_3, window_bounds = array<i64: 1, 1, 4>}, {pipeline_mode = #tpu.pipeline_mode<synchronous>, transform_indices = @transform_4, window_bounds = array<i64: 1, 1, 4>}, {pipeline_mode = #tpu.pipeline_mode<synchronous>, transform_indices = @transform_5, window_bounds = array<i64: 8, 16>}, {pipeline_mode = #tpu.pipeline_mode<synchronous>, transform_indices = @transform_6, window_bounds = array<i64: 8, 1>}, {transform_indices = @transform_7, window_bounds = array<i64: 2, 8, 4>}]} {
    %c0 = arith.constant 0 : index
    %c0_0 = arith.constant 0 : index
    %c0_1 = arith.constant 0 : index
    %0 = vector.load %arg1[%c0, %c0_0, %c0_1] : memref<2x16x4xf32, #tpu.memory_space<vmem>>, vector<2x16x4xf32>
    %c0_2 = arith.constant 0 : index
    %c0_3 = arith.constant 0 : index
    %c0_4 = arith.constant 0 : index
    %1 = vector.load %arg2[%c0_2, %c0_3, %c0_4] : memref<1x16x4xf32, #tpu.memory_space<vmem>>, vector<1x16x4xf32>
    %c0_5 = arith.constant 0 : index
    %c0_6 = arith.constant 0 : index
    %c0_7 = arith.constant 0 : index
    %2 = vector.load %arg3[%c0_5, %c0_6, %c0_7] : memref<1x16x4xf32, #tpu.memory_space<vmem>>, vector<1x16x4xf32>
    %c0_8 = arith.constant 0 : index
    %c0_9 = arith.constant 0 : index
    %c0_10 = arith.constant 0 : index
    %3 = vector.load %arg4[%c0_8, %c0_9, %c0_10] : memref<1x1x4xf32, #tpu.memory_space<vmem>>, vector<1x1x4xf32>
    %c0_11 = arith.constant 0 : index
    %c0_12 = arith.constant 0 : index
    %c0_13 = arith.constant 0 : index
    %4 = vector.load %arg5[%c0_11, %c0_12, %c0_13] : memref<1x1x4xf32, #tpu.memory_space<vmem>>, vector<1x1x4xf32>
    %c0_14 = arith.constant 0 : index
    %c0_15 = arith.constant 0 : index
    %5 = vector.load %arg6[%c0_14, %c0_15] : memref<8x16xbf16, #tpu.memory_space<vmem>>, vector<8x16xbf16>
    %c0_16 = arith.constant 0 : index
    %c0_17 = arith.constant 0 : index
    %6 = vector.load %arg7[%c0_16, %c0_17] : memref<8x1xf32, #tpu.memory_space<vmem>>, vector<8x1xf32>
    %7 = vector.broadcast %1 : vector<1x16x4xf32> to vector<2x16x4xf32>
    %8 = arith.mulf %0, %7 : vector<2x16x4xf32>
    %cst = arith.constant dense<0.000000e+00> : vector<2x4xf32>
    %9 = vector.multi_reduction <add>, %8, %cst [1] : vector<2x16x4xf32> to vector<2x4xf32>
    %10 = vector.shape_cast %9 : vector<2x4xf32> to vector<2x1x4xf32>
    %11 = vector.broadcast %2 : vector<1x16x4xf32> to vector<2x16x4xf32>
    %12 = arith.mulf %0, %11 : vector<2x16x4xf32>
    %cst_18 = arith.constant dense<0.000000e+00> : vector<2x4xf32>
    %13 = vector.multi_reduction <add>, %12, %cst_18 [1] : vector<2x16x4xf32> to vector<2x4xf32>
    %14 = vector.shape_cast %13 : vector<2x4xf32> to vector<2x1x4xf32>
    %15 = vector.broadcast %10 : vector<2x1x4xf32> to vector<2x16x4xf32>
    %16 = arith.subf %0, %15 : vector<2x16x4xf32>
    %17 = vector.broadcast %14 : vector<2x1x4xf32> to vector<2x16x4xf32>
    %18 = arith.subf %0, %17 : vector<2x16x4xf32>
    %19 = arith.mulf %16, %16 : vector<2x16x4xf32>
    %cst_19 = arith.constant dense<0.000000e+00> : vector<2x4xf32>
    %20 = vector.multi_reduction <add>, %19, %cst_19 [1] : vector<2x16x4xf32> to vector<2x4xf32>
    %21 = vector.shape_cast %20 : vector<2x4xf32> to vector<2x1x4xf32>
    %cst_20 = arith.constant 0.0666666701 : f32
    %22 = vector.broadcast %cst_20 : f32 to vector<2x1x4xf32>
    %23 = arith.mulf %21, %22 : vector<2x1x4xf32>
    %cst_21 = arith.constant 9.99999993E-9 : f32
    %24 = vector.broadcast %cst_21 : f32 to vector<2x1x4xf32>
    %25 = arith.addf %23, %24 : vector<2x1x4xf32>
    %26 = math.sqrt %25 : vector<2x1x4xf32>
    %27 = arith.mulf %18, %18 : vector<2x16x4xf32>
    %cst_22 = arith.constant dense<0.000000e+00> : vector<2x4xf32>
    %28 = vector.multi_reduction <add>, %27, %cst_22 [1] : vector<2x16x4xf32> to vector<2x4xf32>
    %29 = vector.shape_cast %28 : vector<2x4xf32> to vector<2x1x4xf32>
    %cst_23 = arith.constant 0.0666666701 : f32
    %30 = vector.broadcast %cst_23 : f32 to vector<2x1x4xf32>
    %31 = arith.mulf %29, %30 : vector<2x1x4xf32>
    %cst_24 = arith.constant 9.99999993E-9 : f32
    %32 = vector.broadcast %cst_24 : f32 to vector<2x1x4xf32>
    %33 = arith.addf %31, %32 : vector<2x1x4xf32>
    %34 = math.sqrt %33 : vector<2x1x4xf32>
    %35 = tpu.reciprocal %26 {approx = true} : vector<2x1x4xf32> -> vector<2x1x4xf32>
    %36 = vector.broadcast %35 : vector<2x1x4xf32> to vector<2x16x4xf32>
    %37 = arith.mulf %16, %36 : vector<2x16x4xf32>
    %38 = vector.broadcast %3 : vector<1x1x4xf32> to vector<2x16x4xf32>
    %39 = arith.mulf %37, %38 : vector<2x16x4xf32>
    %40 = vector.broadcast %4 : vector<1x1x4xf32> to vector<2x16x4xf32>
    %41 = arith.addf %39, %40 : vector<2x16x4xf32>
    %cst_25 = arith.constant 9.99999993E-9 : f32
    %42 = vector.broadcast %cst_25 : f32 to vector<1x1x4xf32>
    %43 = arith.addf %3, %42 : vector<1x1x4xf32>
    %44 = tpu.reciprocal %43 {approx = true} : vector<1x1x4xf32> -> vector<1x1x4xf32>
    %45 = vector.shape_cast %44 : vector<1x1x4xf32> to vector<1x4xf32>
    %46 = vector.shape_cast %4 : vector<1x1x4xf32> to vector<1x4xf32>
    %47 = vector.extract_strided_slice %41 {offsets = [0, 0, 0], sizes = [1, 16, 4], strides = [1, 1, 1]} : vector<2x16x4xf32> to vector<1x16x4xf32>
    %48 = vector.shape_cast %47 : vector<1x16x4xf32> to vector<16x4xf32>
    %49 = arith.truncf %48 : vector<16x4xf32> to vector<16x4xbf16>
    %cst_26 = arith.constant dense<0.000000e+00> : vector<8x4xf32>
    %50 = tpu.matmul %5, %49, %cst_26 {dimension_numbers = #tpu.dot_dimension_numbers<[1], [0], [0], [1], [0, 0, 1, 1], [], []>} : vector<8x16xbf16>, vector<16x4xbf16>, vector<8x4xf32> -> vector<8x4xf32>
    %51 = vector.broadcast %6 : vector<8x1xf32> to vector<8x4xf32>
    %52 = arith.addf %50, %51 : vector<8x4xf32>
    %53 = vector.broadcast %46 : vector<1x4xf32> to vector<8x4xf32>
    %54 = arith.subf %52, %53 : vector<8x4xf32>
    %55 = vector.broadcast %45 : vector<1x4xf32> to vector<8x4xf32>
    %56 = arith.mulf %54, %55 : vector<8x4xf32>
    %57 = vector.extract_strided_slice %34 {offsets = [0, 0, 0], sizes = [1, 1, 4], strides = [1, 1, 1]} : vector<2x1x4xf32> to vector<1x1x4xf32>
    %58 = vector.shape_cast %57 : vector<1x1x4xf32> to vector<1x4xf32>
    %59 = vector.broadcast %58 : vector<1x4xf32> to vector<8x4xf32>
    %60 = arith.mulf %56, %59 : vector<8x4xf32>
    %61 = vector.extract_strided_slice %14 {offsets = [0, 0, 0], sizes = [1, 1, 4], strides = [1, 1, 1]} : vector<2x1x4xf32> to vector<1x1x4xf32>
    %62 = vector.shape_cast %61 : vector<1x1x4xf32> to vector<1x4xf32>
    %63 = vector.broadcast %62 : vector<1x4xf32> to vector<8x4xf32>
    %64 = arith.addf %60, %63 : vector<8x4xf32>
    %c0_27 = arith.constant 0 : index
    %c0_28 = arith.constant 0 : index
    %c0_29 = arith.constant 0 : index
    %65 = vector.load %arg8[%c0_27, %c0_28, %c0_29] : memref<2x8x4xf32, #tpu.memory_space<vmem>>, vector<1x8x4xf32>
    %66 = vector.shape_cast %65 : vector<1x8x4xf32> to vector<8x4xf32>
    %67 = vector.shape_cast %64 : vector<8x4xf32> to vector<1x8x4xf32>
    tpu.vector_store %arg8[%c0_27, %c0_28, %c0_29], %67 {strides = array<i32>} : memref<2x8x4xf32, #tpu.memory_space<vmem>>, vector<1x8x4xf32>,
    %68 = vector.extract_strided_slice %41 {offsets = [1, 0, 0], sizes = [1, 16, 4], strides = [1, 1, 1]} : vector<2x16x4xf32> to vector<1x16x4xf32>
    %69 = vector.shape_cast %68 : vector<1x16x4xf32> to vector<16x4xf32>
    %70 = arith.truncf %69 : vector<16x4xf32> to vector<16x4xbf16>
    %cst_30 = arith.constant dense<0.000000e+00> : vector<8x4xf32>
    %71 = tpu.matmul %5, %70, %cst_30 {dimension_numbers = #tpu.dot_dimension_numbers<[1], [0], [0], [1], [0, 0, 1, 1], [], []>} : vector<8x16xbf16>, vector<16x4xbf16>, vector<8x4xf32> -> vector<8x4xf32>
    %72 = vector.broadcast %6 : vector<8x1xf32> to vector<8x4xf32>
    %73 = arith.addf %71, %72 : vector<8x4xf32>
    %74 = vector.broadcast %46 : vector<1x4xf32> to vector<8x4xf32>
    %75 = arith.subf %73, %74 : vector<8x4xf32>
    %76 = vector.broadcast %45 : vector<1x4xf32> to vector<8x4xf32>
    %77 = arith.mulf %75, %76 : vector<8x4xf32>
    %78 = vector.extract_strided_slice %34 {offsets = [1, 0, 0], sizes = [1, 1, 4], strides = [1, 1, 1]} : vector<2x1x4xf32> to vector<1x1x4xf32>
    %79 = vector.shape_cast %78 : vector<1x1x4xf32> to vector<1x4xf32>
    %80 = vector.broadcast %79 : vector<1x4xf32> to vector<8x4xf32>
    %81 = arith.mulf %77, %80 : vector<8x4xf32>
    %82 = vector.extract_strided_slice %14 {offsets = [1, 0, 0], sizes = [1, 1, 4], strides = [1, 1, 1]} : vector<2x1x4xf32> to vector<1x1x4xf32>
    %83 = vector.shape_cast %82 : vector<1x1x4xf32> to vector<1x4xf32>
    %84 = vector.broadcast %83 : vector<1x4xf32> to vector<8x4xf32>
    %85 = arith.addf %81, %84 : vector<8x4xf32>
    %c1 = arith.constant 1 : index
    %c0_31 = arith.constant 0 : index
    %c0_32 = arith.constant 0 : index
    %86 = vector.load %arg8[%c1, %c0_31, %c0_32] : memref<2x8x4xf32, #tpu.memory_space<vmem>>, vector<1x8x4xf32>
    %87 = vector.shape_cast %86 : vector<1x8x4xf32> to vector<8x4xf32>
    %88 = vector.shape_cast %85 : vector<8x4xf32> to vector<1x8x4xf32>
    tpu.vector_store %arg8[%c1, %c0_31, %c0_32], %88 {strides = array<i32>} : memref<2x8x4xf32, #tpu.memory_space<vmem>>, vector<1x8x4xf32>,
    return
  }
  func.func @transform_0(%arg0: i32) -> (i32, i32, i32) {
    %c0_i32 = arith.constant 0 : i32
    %c0_i32_0 = arith.constant 0 : i32
    %c0_i32_1 = arith.constant 0 : i32
    return %arg0, %c0_i32, %c0_i32_0 : i32, i32, i32
  }
  func.func @transform_1(%arg0: i32) -> (i32, i32, i32) {
    %c0_i32 = arith.constant 0 : i32
    %c0_i32_0 = arith.constant 0 : i32
    %c0_i32_1 = arith.constant 0 : i32
    %c0_i32_2 = arith.constant 0 : i32
    return %c0_i32, %c0_i32_0, %c0_i32_1 : i32, i32, i32
  }
  func.func @transform_2(%arg0: i32) -> (i32, i32, i32) {
    %c0_i32 = arith.constant 0 : i32
    %c0_i32_0 = arith.constant 0 : i32
    %c0_i32_1 = arith.constant 0 : i32
    %c0_i32_2 = arith.constant 0 : i32
    return %c0_i32, %c0_i32_0, %c0_i32_1 : i32, i32, i32
  }
  func.func @transform_3(%arg0: i32) -> (i32, i32, i32) {
    %c0_i32 = arith.constant 0 : i32
    %c0_i32_0 = arith.constant 0 : i32
    %c0_i32_1 = arith.constant 0 : i32
    %c0_i32_2 = arith.constant 0 : i32
    return %c0_i32, %c0_i32_0, %c0_i32_1 : i32, i32, i32
  }
  func.func @transform_4(%arg0: i32) -> (i32, i32, i32) {
    %c0_i32 = arith.constant 0 : i32
    %c0_i32_0 = arith.constant 0 : i32
    %c0_i32_1 = arith.constant 0 : i32
    %c0_i32_2 = arith.constant 0 : i32
    return %c0_i32, %c0_i32_0, %c0_i32_1 : i32, i32, i32
  }
  func.func @transform_5(%arg0: i32) -> (i32, i32) {
    %c0_i32 = arith.constant 0 : i32
    %c0_i32_0 = arith.constant 0 : i32
    %c0_i32_1 = arith.constant 0 : i32
    return %c0_i32, %c0_i32_0 : i32, i32
  }
  func.func @transform_6(%arg0: i32) -> (i32, i32) {
    %c0_i32 = arith.constant 0 : i32
    %c0_i32_0 = arith.constant 0 : i32
    %c0_i32_1 = arith.constant 0 : i32
    return %c0_i32, %c0_i32_0 : i32, i32
  }
  func.func @transform_7(%arg0: i32) -> (i32, i32, i32) {
    %c0_i32 = arith.constant 0 : i32
    %c0_i32_0 = arith.constant 0 : i32
    %c0_i32_1 = arith.constant 0 : i32
    return %arg0, %c0_i32, %c0_i32_0 : i32, i32, i32
  }
}

</mosaic_0001>

<bundles_post_ra>
// kernel: tpu_custom_call.1
= control target key start
LH: loop header
LB: loop body
LE: loop exit
PB: predicated region body
PF: predicated region fallthrough
CT: control target
= control target key end

     0   :  { %vm43_vm0 = vcmask 31744   ;;  %vm220_vm5 = vcmask 130048   ;;  %s456_s0 = inlined_call_operand.vmem [shape: f32[2,16,4], index: 0, kind: input, shape index: {}]   ;;  %s457_s1 = inlined_call_operand.vmem [shape: f32[1,16,4], index: 1, kind: input, shape index: {}]   ;;  %s458_s4 = inlined_call_operand.vmem [shape: f32[1,1,4], index: 4, kind: input, shape index: {}]   ;;  %s459_s6 = inlined_call_operand.vmem [shape: f32[8,1], index: 6, kind: input, shape index: {}]   ;;  %s460_s3 = inlined_call_operand.vmem [shape: f32[1,1,4], index: 3, kind: input, shape index: {}]   ;;  %s461_s5 = inlined_call_operand.vmem [shape: bf16[8,16], index: 5, kind: input, shape index: {}]   ;;  %s462_s2 = inlined_call_operand.vmem [shape: f32[1,16,4], index: 2, kind: input, shape index: {}]   ;;  %s463_s7 = inlined_call_operand.vmem [shape: f32[2,8,4], index: 7, kind: output, shape index: {}]  }
   0x1   :  { %v334_v0 = vld [vmem:[%s456_s0] sm:$0xff]  ;;  %v339_v1 = vld [vmem:[%s456_s0 + $0x8] sm:$0xff]  ;;  %v352_v6 = vld [vmem:[%s456_s0 + $0x10] sm:$0xff] }
   0x2   :  { %v31_v2 = vld [vmem:[%s457_s1] sm:$0xff]  ;;  %v32_v3 = vld [vmem:[%s457_s1 + $0x8] sm:$0xff]  ;;  %v358_v8 = vld [vmem:[%s456_s0 + $0x18] sm:$0xff] }
   0x3   :  { %v39_v4 = vmul.f32 %v31_v2, %v334_v0  ;;  %v40_v5 = vmul.f32 %v32_v3, %v339_v1  ;;  %v41_v9 = vmul.f32 %v31_v2, %v352_v6  ;;  %v42_v11 = vmul.f32 %v32_v3, %v358_v8  ;;  %v38_v63 = vld [vmem:[%s459_s6] sm:$0xff] }
   0x4   :  { %v290_v3 = vmov 0  }
   0x5   :  { %v44_v7 = vsel %vm43_vm0, %v39_v4, 0.0  ;;  %v45_v10 = vsel %vm43_vm0, %v40_v5, 0.0  ;;  %v53_v13 = vsel %vm43_vm0, %v41_v9, 0.0  ;;  %v54_v14 = vsel %vm43_vm0, %v42_v11, 0.0  ;;  %273 = vset.pattern.permute.xlu0 %v290_v3 }
   0x6   :  { %v46_v12 = vadd.f32 %v45_v10, %v44_v7  ;;  %v55_v16 = vadd.f32 %v54_v14, %v53_v13  ;;  %217 = vperm.xlu0 %273, %v38_v63  }
   0x8   :  { %v47_v15 = vrot.slane %v46_v12, 4  ;;  %v56_v18 = vrot.slane %v55_v16, 4 }
   0xa   :  { %v48_v17 = vadd.f32 %v47_v15, %v46_v12  ;;  %v57_v20 = vadd.f32 %v56_v18, %v55_v16 }
   0xc   :  { %v49_v19 = vrot.slane %v48_v17, 2  ;;  %v58_v22 = vrot.slane %v57_v20, 2 }
   0xe   :  { %v50_v21 = vadd.f32 %v49_v19, %v48_v17  ;;  %v59_v24 = vadd.f32 %v58_v22, %v57_v20  ;;  %v274_v20 = vld [vmem:[%s460_s3] ss:$0 sm:$0xff] }
  0x10   :  { %v51_v23 = vrot.slane %v50_v21, 1  ;;  %v60_v26 = vrot.slane %v59_v24, 1 }
  0x12   :  { %v52_v25 = vadd.f32 %v51_v23, %v50_v21  ;;  %v61_v29 = vadd.f32 %v60_v26, %v59_v24  ;;  %v400_v24 = vld [vmem:[%s458_s4] ss:$0 sm:$0xff] }
  0x14   :  { %v366_v27 = vsub.f32 %v334_v0, %v52_v25  ;;  %v369_v28 = vsub.f32 %v339_v1, %v52_v25  ;;  %v376_v32 = vsub.f32 %v352_v6, %v61_v29  ;;  %v379_v33 = vsub.f32 %v358_v8, %v61_v29 }
  0x16   :  { %v92_v30 = vmul.f32 %v366_v27, %v366_v27  ;;  %v93_v31 = vmul.f32 %v369_v28, %v369_v28  ;;  %v94_v36 = vmul.f32 %v376_v32, %v376_v32  ;;  %v95_v37 = vmul.f32 %v379_v33, %v379_v33 }
  0x18   :  { %v96_v34 = vsel %vm43_vm0, %v92_v30, 0.0  ;;  %v97_v35 = vsel %vm43_vm0, %v93_v31, 0.0  ;;  %v105_v39 = vsel %vm43_vm0, %v94_v36, 0.0  ;;  %v106_v40 = vsel %vm43_vm0, %v95_v37, 0.0 }
  0x19   :  { %v98_v38 = vadd.f32 %v97_v35, %v96_v34  ;;  %v107_v42 = vadd.f32 %v106_v40, %v105_v39  ;;  %v37_v39 = vld [vmem:[%s461_s5] sm:$0xf]  ;;  %v34_v40 = vld [vmem:[%s462_s2 + $0x8] sm:$0xff] }
  0x1b   :  { %v99_v41 = vrot.slane %v98_v38, 4  ;;  %v108_v44 = vrot.slane %v107_v42, 4 }
  0x1d   :  { %v100_v43 = vadd.f32 %v99_v41, %v98_v38  ;;  %v109_v46 = vadd.f32 %v108_v44, %v107_v42  ;;  %v63_v42 = vmul.f32 %v34_v40, %v339_v1  ;;  %v65_v44 = vmul.f32 %v34_v40, %v358_v8 }
  0x1f   :  { %v101_v45 = vrot.slane %v100_v43, 2  ;;  %v110_v48 = vrot.slane %v109_v46, 2 }
  0x21   :  { %v102_v47 = vadd.f32 %v101_v45, %v100_v43  ;;  %v111_v50 = vadd.f32 %v110_v48, %v109_v46  ;;  %v67_v46 = vsel %vm43_vm0, %v63_v42, 0.0  ;;  %v76_v48 = vsel %vm43_vm0, %v65_v44, 0.0 }
  0x23   :  { %v103_v49 = vrot.slane %v102_v47, 1  ;;  %v112_v52 = vrot.slane %v111_v50, 1 }
  0x25   :  { %v104_v51 = vadd.f32 %v103_v49, %v102_v47  ;;  %v113_v54 = vadd.f32 %v112_v52, %v111_v50 }
  0x27   :  { %v114_v53 = vmul.f32 0.06666667, %v104_v51  ;;  %v115_v56 = vmul.f32 0.06666667, %v113_v54 }
  0x29   :  { %v116_v55 = vadd.f32 1e-08, %v114_v53  ;;  %v117_v57 = vadd.f32 1e-08, %v115_v56 }
  0x2b   :  { %276 = vrsqrt.f32 %v116_v55  ;;  %vm125_vm1 = vcmp.eq.f32.partialorder %v116_v55, inf  ;;  %v128_v10 = vand.u32 2147483648, %v116_v55  ;;  %vm127_vm2 = vcmp.eq.f32.partialorder %v116_v55, 0.0 }
  0x2c   :  { %278 = vrsqrt.f32 %v117_v57  ;;  %vm137_vm3 = vcmp.eq.f32.partialorder %v117_v57, inf  ;;  %v140_v15 = vand.u32 2147483648, %v117_v57  ;;  %vm139_vm4 = vcmp.eq.f32.partialorder %v117_v57, 0.0 }
  0x31   :  { %v277_v58 = vpop.eup %276 }
  0x32   :  { %v119_v59 = vmul.f32 %v277_v58, %v116_v55  ;;  %v279_v60 = vpop.eup %278 }
  0x33   :  { %v131_v62 = vmul.f32 %v279_v60, %v117_v57 }
  0x34   :  { %v120_v61 = vmul.f32 %v277_v58, %v119_v59 }
  0x35   :  { %v132_v4 = vmul.f32 %v279_v60, %v131_v62 }
  0x36   :  { %v121_v2 = vmul.f32 0.5, %v120_v61 }
  0x37   :  { %v133_v7 = vmul.f32 0.5, %v132_v4 }
  0x38   :  { %v122_v5 = vsub.f32 1.5, %v121_v2 }
  0x39   :  { %v134_v11 = vsub.f32 1.5, %v133_v7 }
  0x3a   :  { %v123_v9 = vmul.f32 %v277_v58, %v122_v5 }
  0x3b   :  { %v135_v13 = vmul.f32 %v279_v60, %v134_v11 }
  0x3c   :  { %v124_v12 = vmul.f32 %v123_v9, %v116_v55 }
  0x3d   :  { %v136_v17 = vmul.f32 %v135_v13, %v117_v57 }
  0x3e   :  { %v126_v14 = vsel %vm125_vm1, %v116_v55, %v124_v12 }
  0x3f   :  { %v129_v16 = vsel %vm127_vm2, %v128_v10, %v126_v14  ;;  %v138_v18 = vsel %vm137_vm3, %v117_v57, %v136_v17 }
  0x40   :  { %280 = vrcp.f32 %v129_v16  ;;  %v141_v19 = vsel %vm139_vm4, %v140_v15, %v138_v18 }
  0x41   :  { %282 = vrcp.f32 %v141_v19 }
  0x46   :  { %v281_v21 = vpop.eup %280 }
  0x47   :  { %v194_v22 = vmul.f32 %v281_v21, %v366_v27  ;;  %v195_v23 = vmul.f32 %v281_v21, %v369_v28  ;;  %v283_v25 = vpop.eup %282 }
  0x48   :  { %v196_v30 = vmul.f32 %v283_v25, %v376_v32  ;;  %v197_v31 = vmul.f32 %v283_v25, %v379_v33  ;;  %v33_v33 = vld [vmem:[%s462_s2] sm:$0xff] }
  0x49   :  { %v201_v26 = vmul.f32 %v274_v20, %v194_v22  ;;  %v202_v29 = vmul.f32 %v274_v20, %v195_v23  ;;  %v62_v41 = vmul.f32 %v33_v33, %v334_v0  ;;  %v64_v43 = vmul.f32 %v33_v33, %v352_v6 }
  0x4a   :  { %v203_v36 = vmul.f32 %v274_v20, %v196_v30  ;;  %v204_v27 = vmul.f32 %v274_v20, %v197_v31 }
  0x4b   :  { %v208_v34 = vadd.f32 %v400_v24, %v201_v26  ;;  %v209_v35 = vadd.f32 %v400_v24, %v202_v29  ;;  %v66_v45 = vsel %vm43_vm0, %v62_v41, 0.0  ;;  %v75_v47 = vsel %vm43_vm0, %v64_v43, 0.0 }
  0x4c   :  { %v210_v28 = vadd.f32 %v400_v24, %v203_v36  ;;  %v211_v38 = vadd.f32 %v400_v24, %v204_v27  ;;  %v68_v49 = vadd.f32 %v67_v46, %v66_v45  ;;  %v77_v50 = vadd.f32 %v76_v48, %v75_v47 }
  0x4d   :  { %v214_v37 = vpack.c.bf16 %v209_v35, %v208_v34 }
  0x4e   :  { %v245_v32 = vpack.c.bf16 %v211_v38, %v210_v28  ;;  %v69_v51 = vrot.slane %v68_v49, 4  ;;  %v78_v52 = vrot.slane %v77_v50, 4  ;;  %v35_v38 = vld [vmem:[%s460_s3] sm:$0x1] }
  0x4f   :  { %231 = vmatpush.bf16.msra.mxu0 %v214_v37 }
  0x50   :  { %253 = vmatpush.bf16.msra.mxu1 %v245_v32  ;;  %v70_v53 = vadd.f32 %v69_v51, %v68_v49  ;;  %v79_v54 = vadd.f32 %v78_v52, %v77_v50  ;;  %v212_v32 = vadd.f32 1e-08, %v35_v38 }
  0x52   :  { %269 = vmatmul.msk.bf16.vlgmr.msra.gmra.mxu0 %vm220_vm5, %v37_v39  ;;  %v71_v55 = vrot.slane %v70_v53, 2  ;;  %v80_v56 = vrot.slane %v79_v54, 2 }
  0x53   :  { %270 = vmatmul.msk.bf16.vlgmr.msra.gmra.mxu1 %vm220_vm5, %v37_v39 }
  0x54   :  { %v72_v57 = vadd.f32 %v71_v55, %v70_v53  ;;  %v81_v58 = vadd.f32 %v80_v56, %v79_v54 }
  0x56   :  { %v73_v59 = vrot.slane %v72_v57, 1  ;;  %v82_v60 = vrot.slane %v81_v58, 1 }
  0x58   :  { %v425_v61 = vadd.f32 %v73_v59, %v72_v57  ;;  %v427_v62 = vadd.f32 %v82_v60, %v81_v58 }
  0x5a   :  { %v88_v63 = vsub.f32 %v334_v0, %v425_v61  ;;  %v89_v2 = vsub.f32 %v339_v1, %v425_v61  ;;  %v90_v3 = vsub.f32 %v352_v6, %v427_v62  ;;  %v91_v4 = vsub.f32 %v358_v8, %v427_v62 }
  0x5c   :  { %v142_v5 = vmul.f32 %v88_v63, %v88_v63  ;;  %v143_v7 = vmul.f32 %v89_v2, %v89_v2  ;;  %v144_v9 = vmul.f32 %v90_v3, %v90_v3  ;;  %v145_v10 = vmul.f32 %v91_v4, %v91_v4 }
  0x5e   :  { %v146_v11 = vsel %vm43_vm0, %v142_v5, 0.0  ;;  %v147_v12 = vsel %vm43_vm0, %v143_v7, 0.0  ;;  %v155_v13 = vsel %vm43_vm0, %v144_v9, 0.0  ;;  %v156_v0 = vsel %vm43_vm0, %v145_v10, 0.0 }
  0x5f   :  { %v148_v14 = vadd.f32 %v147_v12, %v146_v11  ;;  %v157_v1 = vadd.f32 %v156_v0, %v155_v13 }
  0x61   :  { %v149_v15 = vrot.slane %v148_v14, 4  ;;  %v158_v16 = vrot.slane %v157_v1, 4 }
  0x63   :  { %v150_v6 = vadd.f32 %v149_v15, %v148_v14  ;;  %v159_v17 = vadd.f32 %v158_v16, %v157_v1 }
  0x65   :  { %v151_v18 = vrot.slane %v150_v6, 2  ;;  %v160_v8 = vrot.slane %v159_v17, 2 }
  0x67   :  { %v152_v19 = vadd.f32 %v151_v18, %v150_v6  ;;  %v161_v20 = vadd.f32 %v160_v8, %v159_v17 }
  0x69   :  { %v153_v21 = vrot.slane %v152_v19, 1  ;;  %v162_v22 = vrot.slane %v161_v20, 1 }
  0x6b   :  { %v154_v23 = vadd.f32 %v153_v21, %v152_v19  ;;  %v163_v25 = vadd.f32 %v162_v22, %v161_v20 }
  0x6d   :  { %v164_v26 = vmul.f32 0.06666667, %v154_v23  ;;  %v165_v29 = vmul.f32 0.06666667, %v163_v25 }
  0x6f   :  { %v166_v30 = vadd.f32 1e-08, %v164_v26  ;;  %v167_v31 = vadd.f32 1e-08, %v165_v29 }
  0x71   :  { %284 = vrsqrt.f32 %v166_v30  ;;  %vm175_vm6 = vcmp.eq.f32.partialorder %v166_v30, inf  ;;  %vm177_vm7 = vcmp.eq.f32.partialorder %v166_v30, 0.0  ;;  %v178_v47 = vand.u32 2147483648, %v166_v30 }
  0x72   :  { %286 = vrsqrt.f32 %v167_v31  ;;  %vm187_vm8 = vcmp.eq.f32.partialorder %v167_v31, inf  ;;  %v190_v54 = vand.u32 2147483648, %v167_v31  ;;  %vm189_vm9 = vcmp.eq.f32.partialorder %v167_v31, 0.0 }
  0x73   :  { %288 = vrcp.f32 %v212_v32 }
  0x77   :  { %v285_v34 = vpop.eup %284 }
  0x78   :  { %v287_v35 = vpop.eup %286  ;;  %v169_v36 = vmul.f32 %v285_v34, %v166_v30  ;;  %v218_v46 = vpop.permute.xlu0 %217 }
  0x79   :  { %v181_v27 = vmul.f32 %v287_v35, %v167_v31  ;;  %v289_v45 = vpop.eup %288 }
  0x7a   :  { %v170_v37 = vmul.f32 %v285_v34, %v169_v36  ;;  %v239_v52 = vperm.slane %v289_v45, 0 }
  0x7b   :  { %v182_v28 = vmul.f32 %v287_v35, %v181_v27 }
  0x7c   :  { %v171_v39 = vmul.f32 0.5, %v170_v37 }
  0x7d   :  { %v183_v33 = vmul.f32 0.5, %v182_v28 }
  0x7e   :  { %v172_v40 = vsub.f32 1.5, %v171_v39 }
  0x7f   :  { %v184_v41 = vsub.f32 1.5, %v183_v33 }
  0x80   :  { %v173_v42 = vmul.f32 %v285_v34, %v172_v40 }
  0x81   :  { %v185_v43 = vmul.f32 %v287_v35, %v184_v41 }
  0x82   :  { %v174_v44 = vmul.f32 %v173_v42, %v166_v30 }
  0x83   :  { %v186_v49 = vmul.f32 %v185_v43, %v167_v31 }
  0x84   :  { %v176_v50 = vsel %vm175_vm6, %v166_v30, %v174_v44 }
  0x85   :  { %v179_v56 = vsel %vm177_vm7, %v178_v47, %v176_v50  ;;  %v188_v57 = vsel %vm187_vm8, %v167_v31, %v186_v49 }
  0x86   :  { %v191_v2 = vsel %vm189_vm9, %v190_v54, %v188_v57 }
  0xcf   :  { %v233_v48 = vpop.f32.mrf.mxu0 }
  0xd0   :  { %v234_v51 = vadd.f32 %v233_v48, %v218_v46  ;;  %v255_v55 = vpop.f32.mrf.mxu1 }
  0xd1   :  { %v256_v58 = vadd.f32 %v255_v55, %v218_v46 }
  0xd2   :  { %v237_v53 = vsub.f32 %v234_v51, %v400_v24 }
  0xd3   :  { %v259_v60 = vsub.f32 %v256_v58, %v400_v24 }
  0xd4   :  { %v241_v59 = vmul.f32 %v239_v52, %v237_v53 }
  0xd5   :  { %v260_v3 = vmul.f32 %v259_v60, %v239_v52 }
  0xd6   :  { %v242_v63 = vmul.f32 %v241_v59, %v179_v56 }
  0xd7   :  { %v235_v4 = vpop.f32.mrf.mxu0  ;;  %v261_v7 = vmul.f32 %v260_v3, %v191_v2 }
  0xd8   :  { %v243_v5 = vadd.f32 %v242_v63, %v425_v61  ;;  %v257_v9 = vpop.f32.mrf.mxu1 }
  0xd9   :  { %v262_v10 = vadd.f32 %v261_v7, %v427_v62 }
  0xda   :  { %244 = vst.msk [vmem:[%s463_s7] sm:$0xff] %vm43_vm0, %v243_v5 }
  0xdb   :  { %271 = vst.msk [vmem:[%s463_s7 + $0x8] sm:$0xff] %vm43_vm0, %v262_v10 }

</bundles_post_ra>
